<compile_context>
chip_gen: v6e
topology: v6e:2x2x1
jax: 0.10.0
libtpu: 0.0.40
codegen_flags: <defaults>
</compile_context>

<pallas_src>
import math

import numpy as np
import jax
import jax.numpy as jnp
from jax import lax
from jax.experimental import pallas as pl
from jax.experimental.pallas import tpu as pltpu


def _gelu_exact(x):
    # PyTorch nn.GELU() default is the exact (erf-based) formulation.
    return 0.5 * x * (1.0 + lax.erf(x * (1.0 / math.sqrt(2.0))))


def _round_up(n, m):
    return ((n + m - 1) // m) * m


def _pad_cast(a, shape, dtype):
    """Zero-pad `a` to `shape` and cast to `dtype`; no-op when already matching."""
    if tuple(a.shape) == tuple(shape) and a.dtype == jnp.dtype(dtype):
        return a
    out = jnp.zeros(shape, dtype)
    return out.at[tuple(slice(0, s) for s in a.shape)].set(a.astype(dtype))


def mlp_kernel(x_ref, w1_ref, b1_ref, w2_ref, b2_ref, o_ref, acc_ref, h_ref):
    j = pl.program_id(1)
    k = pl.program_id(2)
    th = w2_ref.shape[0]
    h_off = pl.multiple_of(k * th, th)   # th is a multiple of 128 -> lane aligned

    @pl.when(k == 0)
    def _():
        acc_ref[...] = jnp.zeros_like(acc_ref)

    # fc1 + bias + exact GELU only once per (M tile, H slab): computed for the
    # first O tile and cached in VMEM (bf16, the MXU input dtype of fc2).
    @pl.when(j == 0)
    def _():
        h = jnp.dot(x_ref[...], w1_ref[...], preferred_element_type=jnp.float32)
        h = _gelu_exact(h + b1_ref[...])
        h_ref[:, pl.ds(h_off, th)] = h.astype(h_ref.dtype)

    # fc2 partial product: (tm, th) @ (th, tn), f32-accumulated across H slabs.
    acc_ref[...] += jnp.dot(h_ref[:, pl.ds(h_off, th)], w2_ref[...],
                            preferred_element_type=jnp.float32)

    @pl.when(k == pl.num_programs(2) - 1)
    def _():
        o_ref[...] = (acc_ref[...] + b2_ref[...]).astype(o_ref.dtype)


def mlp_pallas(x, w1, b1, w2, b2, *, tm=512, th=512,
               out_dtype=jnp.float32,
               vmem_budget_bytes=40 * 1024 * 1024):
    """x: (M, D); w1: (D, H); b1: (H,); w2: (H, O); b2: (O,).  Returns (M, O)."""
    M, D = x.shape
    H = w1.shape[1]
    O = w2.shape[1]
    out_bytes = np.dtype(out_dtype).itemsize

    # ---- lane-dense padded problem sizes (pad only to 128, not tile size) --
    Dp = _round_up(D, 128)
    Hp = _round_up(H, 128)
    Op = _round_up(O, 128)

    # Token tile: multiple of 16 (bf16 native (16,128) tiling), capped at M.
    tm = min(tm, _round_up(M, 16))
    tm = max(16, (tm // 16) * 16)
    Mp = _round_up(M, tm)

    # Hidden tile: largest multiple of 128 that divides Hp and is <= th.
    th = max(128, (th // 128) * 128)
    th = next(t for t in range(min(th, Hp), 0, -128) if Hp % t == 0)

    # Output tile: largest 128-multiple divisor of Op whose working set fits.
    def working_set(tn_):
        ws = 0
        ws += 2 * tm * Dp * 2            # x tile (double-buffered, bf16)
        ws += 2 * Dp * th * 2            # w1 H-slab
        ws += 2 * th * 4                 # b1 slab
        ws += 2 * th * tn_ * 2           # w2 tile
        ws += 2 * tn_ * 4                # b2 slab
        ws += 2 * tm * tn_ * out_bytes   # output tile
        ws += tm * tn_ * 4               # f32 accumulator scratch
        ws += tm * Hp * 2                # bf16 GELU(fc1) cache
        return ws

    tn_cands = [t for t in range(Op, 0, -128) if Op % t == 0]
    tn = next((t for t in tn_cands if working_set(t) <= vmem_budget_bytes),
              tn_cands[-1])

    num_i, num_j, num_k = Mp // tm, Op // tn, Hp // th

    # ---- pad/cast operands (fast path skips the copy when already aligned) -
    xp = _pad_cast(x, (Mp, Dp), jnp.bfloat16)
    w1p = _pad_cast(w1, (Dp, Hp), jnp.bfloat16)
    b1p = _pad_cast(b1.reshape(1, H), (1, Hp), jnp.float32)
    w2p = _pad_cast(w2, (Hp, Op), jnp.bfloat16)
    b2p = _pad_cast(b2.reshape(1, O), (1, Op), jnp.float32)

    # w1/b1 are only consumed on the j == 0 pass; pin their block index for
    # j > 0 so the pipeline does not re-stream them from HBM per O tile.
    if num_j > 1:
        w1_map = lambda i, j, k: (0, jnp.where(j == 0, k, num_k - 1))
        b1_map = lambda i, j, k: (0, jnp.where(j == 0, k, num_k - 1))
    else:
        w1_map = lambda i, j, k: (0, k)
        b1_map = lambda i, j, k: (0, k)

    # Advisory cost estimate reflecting actual traffic (fc1 done once; weights
    # streamed once per M tile thanks to the h-cache + pinned index maps).
    flops = 2 * Mp * Dp * Hp + 2 * Mp * Hp * Op
    bytes_accessed = (Mp * Dp * 2                # x (once per M tile)
                      + num_i * Dp * Hp * 2      # w1 streamed per M tile
                      + num_i * Hp * Op * 2      # w2 streamed per M tile
                      + Hp * 4 + Op * 4          # biases
                      + Mp * Op * out_bytes)     # output writeback

    vmem_limit = int(min(max(working_set(tn) * 5 // 4 + (2 << 20), 32 << 20),
                         98 << 20))

    out = pl.pallas_call(
        mlp_kernel,
        out_shape=jax.ShapeDtypeStruct((Mp, Op), out_dtype),
        grid_spec=pltpu.PrefetchScalarGridSpec(
            num_scalar_prefetch=0,
            grid=(num_i, num_j, num_k),
            in_specs=[
                pl.BlockSpec((tm, Dp), lambda i, j, k: (i, 0)),   # x tile
                pl.BlockSpec((Dp, th), w1_map),                   # w1 H-slab
                pl.BlockSpec((1, th), b1_map),                    # b1 H-slab
                pl.BlockSpec((th, tn), lambda i, j, k: (k, j)),   # w2 tile
                pl.BlockSpec((1, tn), lambda i, j, k: (0, j)),    # b2 O-slab
            ],
            out_specs=pl.BlockSpec((tm, tn), lambda i, j, k: (i, j)),
            scratch_shapes=[
                pltpu.VMEM((tm, tn), jnp.float32),    # fc2 f32 accumulator
                pltpu.VMEM((tm, Hp), jnp.bfloat16),   # GELU(fc1) cache
            ],
        ),
        compiler_params=pltpu.CompilerParams(
            dimension_semantics=("parallel", "arbitrary", "arbitrary"),
            vmem_limit_bytes=vmem_limit,
        ),
        cost_estimate=pl.CostEstimate(
            flops=flops,
            transcendentals=Mp * Hp,
            bytes_accessed=bytes_accessed,
        ),
    )(xp, w1p, b1p, w2p, b2p)

    return out[:M, :O]


def mlp_reference(x, w1, b1, w2, b2):
    h = x @ w1 + b1
    h = _gelu_exact(h)
    return h @ w2 + b2


if __name__ == "__main__":
    # Small shapes consistent with the module: batch=2, seq=8, features=32.
    B, S = 2, 8
    in_features = 32
    hidden_features = 64
    out_features = 32

    key = jax.random.PRNGKey(0)
    kx, k1, k2, k3, k4 = jax.random.split(key, 5)

    x = jax.random.normal(kx, (B, S, in_features), dtype=jnp.float32)

    # Deterministic parameter init (shapes from nn.Linear in __init__),
    # stored transposed relative to PyTorch: (in, out).
    w1 = jax.random.normal(k1, (in_features, hidden_features), jnp.float32) * 0.02
    b1 = jax.random.normal(k2, (hidden_features,), jnp.float32) * 0.02
    w2 = jax.random.normal(k3, (hidden_features, out_features), jnp.float32) * 0.02
    b2 = jax.random.normal(k4, (out_features,), jnp.float32) * 0.02

    # Flatten tokens: (B, S, D) -> (B*S, D)
    x2d = x.reshape(B * S, in_features)

    out2d = mlp_pallas(x2d, w1, b1, w2, b2)
    out = out2d.reshape(B, S, out_features)
    jax.block_until_ready(out)

    # Correctness check vs pure-JAX f32 reference (tolerance relaxed because
    # the kernel feeds the MXU bf16 operands with f32 accumulation).
    ref = mlp_reference(x2d, w1, b1, w2, b2).reshape(B, S, out_features)
    assert jnp.allclose(out, ref, atol=1e-2, rtol=1e-2), "mismatch vs reference"

    print("KERNEL_OK")
</pallas_src>

<mosaic_0001>
module attributes {stable_mosaic.version = 11 : i64} {
  func.func @mlp_kernel(%arg0: i32, %arg1: i32, %arg2: i32, %arg3: memref<16x128xbf16, #tpu.memory_space<vmem>>, %arg4: memref<128x128xbf16, #tpu.memory_space<vmem>>, %arg5: memref<1x128xf32, #tpu.memory_space<vmem>>, %arg6: memref<128x128xbf16, #tpu.memory_space<vmem>>, %arg7: memref<1x128xf32, #tpu.memory_space<vmem>>, %arg8: memref<16x128xf32, #tpu.memory_space<vmem>>, %arg9: memref<16x128xf32, #tpu.memory_space<vmem>>, %arg10: memref<16x128xbf16, #tpu.memory_space<vmem>>) attributes {dimension_semantics = [#tpu.dimension_semantics<parallel>, #tpu.dimension_semantics<arbitrary>, #tpu.dimension_semantics<arbitrary>], iteration_bounds = array<i64: 1, 1, 1>, scalar_prefetch = 0 : i64, scratch_operands = 2 : i64, tpu.core_type = #tpu.core_type<tc>, window_params = [{transform_indices = @transform_0, window_bounds = array<i64: 16, 128>}, {transform_indices = @transform_1, window_bounds = array<i64: 128, 128>}, {transform_indices = @transform_2, window_bounds = array<i64: 1, 128>}, {transform_indices = @transform_3, window_bounds = array<i64: 128, 128>}, {transform_indices = @transform_4, window_bounds = array<i64: 1, 128>}, {transform_indices = @transform_5, window_bounds = array<i64: 16, 128>}]} {
    %c128_i32 = arith.constant 128 : i32
    %0 = arith.muli %arg2, %c128_i32 : i32
    %1 = tpu.assume_multiple %0, 128 : i32
    %c0_i32 = arith.constant 0 : i32
    %2 = arith.cmpi eq, %arg2, %c0_i32 : i32
    %3 = arith.extui %2 : i1 to i32
    %c0_i32_0 = arith.constant 0 : i32
    %4 = arith.cmpi ne, %3, %c0_i32_0 : i32
    scf.if %4 {
      %cst_11 = arith.constant 0.000000e+00 : f32
      %18 = vector.broadcast %cst_11 : f32 to vector<16x128xf32>
      %c0_12 = arith.constant 0 : index
      %c0_13 = arith.constant 0 : index
      %19 = vector.load %arg9[%c0_12, %c0_13] : memref<16x128xf32, #tpu.memory_space<vmem>>, vector<16x128xf32>
      tpu.vector_store %arg9[%c0_12, %c0_13], %18 {strides = array<i32>} : memref<16x128xf32, #tpu.memory_space<vmem>>, vector<16x128xf32>,
    } else {
    }
    %c0_i32_1 = arith.constant 0 : i32
    %5 = arith.cmpi eq, %arg1, %c0_i32_1 : i32
    %6 = arith.extui %5 : i1 to i32
    %c0_i32_2 = arith.constant 0 : i32
    %7 = arith.cmpi ne, %6, %c0_i32_2 : i32
    scf.if %7 {
      %c0_11 = arith.constant 0 : index
      %c0_12 = arith.constant 0 : index
      %18 = vector.load %arg3[%c0_11, %c0_12] : memref<16x128xbf16, #tpu.memory_space<vmem>>, vector<16x128xbf16>
      %c0_13 = arith.constant 0 : index
      %c0_14 = arith.constant 0 : index
      %19 = vector.load %arg4[%c0_13, %c0_14] : memref<128x128xbf16, #tpu.memory_space<vmem>>, vector<128x128xbf16>
      %cst_15 = arith.constant dense<0.000000e+00> : vector<16x128xf32>
      %20 = tpu.matmul %18, %19, %cst_15 {dimension_numbers = #tpu.dot_dimension_numbers<[1], [0], [0], [1], [0, 0, 1, 1], [], []>} : vector<16x128xbf16>, vector<128x128xbf16>, vector<16x128xf32> -> vector<16x128xf32>
      %c0_16 = arith.constant 0 : index
      %c0_17 = arith.constant 0 : index
      %21 = vector.load %arg5[%c0_16, %c0_17] : memref<1x128xf32, #tpu.memory_space<vmem>>, vector<1x128xf32>
      %22 = vector.broadcast %21 : vector<1x128xf32> to vector<16x128xf32>
      %23 = arith.addf %20, %22 : vector<16x128xf32>
      %cst_18 = arith.constant 5.000000e-01 : f32
      %24 = vector.broadcast %cst_18 : f32 to vector<16x128xf32>
      %25 = arith.mulf %24, %23 : vector<16x128xf32>
      %cst_19 = arith.constant 0.707106769 : f32
      %26 = vector.broadcast %cst_19 : f32 to vector<16x128xf32>
      %27 = arith.mulf %23, %26 : vector<16x128xf32>
      %28 = math.erf %27 : vector<16x128xf32>
      %cst_20 = arith.constant 1.000000e+00 : f32
      %29 = vector.broadcast %cst_20 : f32 to vector<16x128xf32>
      %30 = arith.addf %29, %28 : vector<16x128xf32>
      %31 = arith.mulf %25, %30 : vector<16x128xf32>
      %32 = arith.truncf %31 : vector<16x128xf32> to vector<16x128xbf16>
      %c0_21 = arith.constant 0 : index
      %33 = arith.index_cast %1 : i32 to index
      %34 = vector.load %arg10[%c0_21, %33] : memref<16x128xbf16, #tpu.memory_space<vmem>>, vector<16x128xbf16>
      tpu.vector_store %arg10[%c0_21, %33], %32 {strides = array<i32>} : memref<16x128xbf16, #tpu.memory_space<vmem>>, vector<16x128xbf16>,
    } else {
    }
    %c0 = arith.constant 0 : index
    %c0_3 = arith.constant 0 : index
    %8 = vector.load %arg9[%c0, %c0_3] : memref<16x128xf32, #tpu.memory_space<vmem>>, vector<16x128xf32>
    %c0_4 = arith.constant 0 : index
    %9 = arith.index_cast %1 : i32 to index
    %10 = vector.load %arg10[%c0_4, %9] : memref<16x128xbf16, #tpu.memory_space<vmem>>, vector<16x128xbf16>
    %c0_5 = arith.constant 0 : index
    %c0_6 = arith.constant 0 : index
    %11 = vector.load %arg6[%c0_5, %c0_6] : memref<128x128xbf16, #tpu.memory_space<vmem>>, vector<128x128xbf16>
    %cst = arith.constant dense<0.000000e+00> : vector<16x128xf32>
    %12 = tpu.matmul %10, %11, %cst {dimension_numbers = #tpu.dot_dimension_numbers<[1], [0], [0], [1], [0, 0, 1, 1], [], []>} : vector<16x128xbf16>, vector<128x128xbf16>, vector<16x128xf32> -> vector<16x128xf32>
    %13 = arith.addf %8, %12 : vector<16x128xf32>
    %c0_7 = arith.constant 0 : index
    %c0_8 = arith.constant 0 : index
    %14 = vector.load %arg9[%c0_7, %c0_8] : memref<16x128xf32, #tpu.memory_space<vmem>>, vector<16x128xf32>
    tpu.vector_store %arg9[%c0_7, %c0_8], %13 {strides = array<i32>} : memref<16x128xf32, #tpu.memory_space<vmem>>, vector<16x128xf32>,
    %c0_i32_9 = arith.constant 0 : i32
    %15 = arith.cmpi eq, %arg2, %c0_i32_9 : i32
    %16 = arith.extui %15 : i1 to i32
    %c0_i32_10 = arith.constant 0 : i32
    %17 = arith.cmpi ne, %16, %c0_i32_10 : i32
    scf.if %17 {
      %c0_11 = arith.constant 0 : index
      %c0_12 = arith.constant 0 : index
      %18 = vector.load %arg9[%c0_11, %c0_12] : memref<16x128xf32, #tpu.memory_space<vmem>>, vector<16x128xf32>
      %c0_13 = arith.constant 0 : index
      %c0_14 = arith.constant 0 : index
      %19 = vector.load %arg7[%c0_13, %c0_14] : memref<1x128xf32, #tpu.memory_space<vmem>>, vector<1x128xf32>
      %20 = vector.broadcast %19 : vector<1x128xf32> to vector<16x128xf32>
      %21 = arith.addf %18, %20 : vector<16x128xf32>
      %c0_15 = arith.constant 0 : index
      %c0_16 = arith.constant 0 : index
      %22 = vector.load %arg8[%c0_15, %c0_16] : memref<16x128xf32, #tpu.memory_space<vmem>>, vector<16x128xf32>
      tpu.vector_store %arg8[%c0_15, %c0_16], %21 {strides = array<i32>} : memref<16x128xf32, #tpu.memory_space<vmem>>, vector<16x128xf32>,
    } else {
    }
    return
  }
  func.func @transform_0(%arg0: i32, %arg1: i32, %arg2: i32) -> (i32, i32) {
    %c0_i32 = arith.constant 0 : i32
    %c0_i32_0 = arith.constant 0 : i32
    return %arg0, %c0_i32 : i32, i32
  }
  func.func @transform_1(%arg0: i32, %arg1: i32, %arg2: i32) -> (i32, i32) {
    %c0_i32 = arith.constant 0 : i32
    %c0_i32_0 = arith.constant 0 : i32
    return %c0_i32, %arg2 : i32, i32
  }
  func.func @transform_2(%arg0: i32, %arg1: i32, %arg2: i32) -> (i32, i32) {
    %c0_i32 = arith.constant 0 : i32
    %c0_i32_0 = arith.constant 0 : i32
    return %c0_i32, %arg2 : i32, i32
  }
  func.func @transform_3(%arg0: i32, %arg1: i32, %arg2: i32) -> (i32, i32) {
    %c0_i32 = arith.constant 0 : i32
    return %arg2, %arg1 : i32, i32
  }
  func.func @transform_4(%arg0: i32, %arg1: i32, %arg2: i32) -> (i32, i32) {
    %c0_i32 = arith.constant 0 : i32
    %c0_i32_0 = arith.constant 0 : i32
    return %c0_i32, %arg1 : i32, i32
  }
  func.func @transform_5(%arg0: i32, %arg1: i32, %arg2: i32) -> (i32, i32) {
    %c0_i32 = arith.constant 0 : i32
    return %arg0, %arg1 : i32, i32
  }
}

</mosaic_0001>

<bundles_post_ra>
// kernel: tpu_custom_call.1
= control target key start
LH: loop header
LB: loop body
LE: loop exit
PB: predicated region body
PF: predicated region fallthrough
CT: control target
= control target key end

     0   :  { %10 = vsyncpa [#allocation5], 0  ;;  %s642_s0 = inlined_call_operand.hbm [shape: bf16[16,128], index: 0, kind: input, shape index: {}]   ;;  %s643_s1 = inlined_call_operand.hbm [shape: bf16[128,128], index: 1, kind: input, shape index: {}]   ;;  %s644_s2 = inlined_call_operand.vmem [shape: f32[1,128], index: 2, kind: input, shape index: {}]   ;;  %s645_s3 = inlined_call_operand.hbm [shape: bf16[128,128], index: 3, kind: input, shape index: {}]   ;;  %s646_s4 = inlined_call_operand.vmem [shape: f32[1,128], index: 4, kind: input, shape index: {}]   ;;  %s647_s5 = inlined_call_operand.hbm [shape: f32[16,128], index: 5, kind: output, shape index: {}]  }
   0x1   :  { %11 = vsyncpa [#allocation8], 0 }
   0x2   :  { %12 = vsyncpa [#allocation6], 0  ;;  %s584_s18 = smov [#allocation7]   ;;  %s585_s20 = smov [#allocation4]  }
   0x3   :  { %s30_s19 = sshll.u32 %s584_s18, 4  ;;  %s18_s21 = sshll.u32 %s585_s20, 4  ;;  %s31_s19 = int_to_ptr.vmem [resolvable:$true] %s30_s19  ;;  %s19_s21 = int_to_ptr.vmem [resolvable:$true] %s18_s21 }
   0x4   :  { %s506_s22 = scalar_lea.vmem %s31_s19, 1024  ;;  %p511_p1 = scmp.lt.s32.totalorder %s31_s19, %s31_s19 }
   0x5   :  { %p507_p0 = scmp.ne.s32.totalorder %s31_s19, %s506_s22  ;;  %p512_p2 = scmp.lt.s32.totalorder %s506_s22, %s506_s22 }
   0x7   :  { %p513_p3 = por %p512_p2, %p511_p1 }
   0x9   :  { %p514_p4 = pnand %p513_p3, %p507_p0 }
   0xb   :  { %517 = shalt.err (!%p514_p4)
}
   0xc   :  { %s586_s23 = smov 64   ;;  %s587_s24 = smov 4  }
   0xd   :  { %36 = dma.hbm_to_vmem [thread:$0]  %s643_s1, 1024, %s31_s19, [#allocation8], %s586_s23, %s586_s23, %s587_s24  }
   0xe   :  { %s526_s27 = scalar_lea.vmem %s19_s21, 128  ;;  %p531_p6 = scmp.lt.s32.totalorder %s19_s21, %s19_s21 }
   0xf   :  { %p527_p5 = scmp.ne.s32.totalorder %s19_s21, %s526_s27  ;;  %p532_p7 = scmp.lt.s32.totalorder %s526_s27, %s526_s27 }
  0x11   :  { %p533_p8 = por %p532_p7, %p531_p6 }
  0x13   :  { %p534_p9 = pnand %p533_p8, %p527_p5 }
  0x15   :  { %537 = shalt.err (!%p534_p9)
}
  0x16   :  { %24 = dma.hbm_to_vmem [thread:$0]  %s642_s0, 128, %s19_s21, [#allocation5], %s586_s23, %s586_s23, %s587_s24  }
  0x17   :  { %s588_s30 = smov [#allocation9]  }
  0x18   :  { %s44_s6 = sshll.u32 %s588_s30, 4  ;;  %s45_s6 = int_to_ptr.vmem [resolvable:$true] %s44_s6 }
  0x19   :  { %s546_s7 = scalar_lea.vmem %s45_s6, 1024  ;;  %p551_p11 = scmp.lt.s32.totalorder %s45_s6, %s45_s6 }
  0x1a   :  { %p547_p10 = scmp.ne.s32.totalorder %s45_s6, %s546_s7  ;;  %p552_p12 = scmp.lt.s32.totalorder %s546_s7, %s546_s7 }
  0x1c   :  { %p553_p13 = por %p552_p12, %p551_p11 }
  0x1e   :  { %p554_p0 = pnand %p553_p13, %p547_p10 }
  0x20   :  { %557 = shalt.err (!%p554_p0)
}
  0x21   :  { %50 = dma.hbm_to_vmem [thread:$0]  %s645_s3, 1024, %s45_s6, [#allocation8], %s586_s23, %s586_s23, %s587_s24  }
  0x22   :  { %578 = dma.done.wait [#allocation5], 128  }
  0x23   :  { %579 = vsyncadd [#allocation5], 4294967168 }
  0x24   :  { %580 = dma.done.wait [#allocation8], 2048  }
  0x25   :  { %581 = vsyncadd [#allocation8], 4294965248  ;;  %v589_v0 = vmov 0.0   ;;  %vm590_vm0 = vmmov 0   ;;  %v476_v1 = vld [vmem:[#allocation7 + $0x38] sm:$0xff]   ;;  %v477_v2 = vld [vmem:[#allocation7 + $0x30] sm:$0xff]  }
  0x26   :  { %426 = vmatprep.subr.bf16.mxu0 %v589_v0  ;;  %442 = vmatprep.mubr.msk.bf16.mxu0 %vm590_vm0, %v589_v0  ;;  %v478_v3 = vld [vmem:[#allocation7 + $0x28] sm:$0xff]   ;;  %v479_v4 = vld [vmem:[#allocation7 + $0x20] sm:$0xff]   ;;  %v480_v5 = vld [vmem:[#allocation7 + $0x18] sm:$0xff]   ;;  %s591_s10 = smov [#allocation10]  }
  0x27   :  { %446 = vmatprep.subr.bf16.mxu1 %v589_v0  ;;  %462 = vmatprep.mubr.msk.bf16.mxu1 %vm590_vm0, %v589_v0  ;;  %v481_v6 = vld [vmem:[#allocation7 + $0x10] sm:$0xff]   ;;  %v482_v7 = vld [vmem:[#allocation7 + $0x8] sm:$0xff]   ;;  %v483_v8 = vld [vmem:[#allocation7] sm:$0xff]   ;;  %s362_s11 = sshll.u32 %s591_s10, 4  ;;  %s363_s11 = int_to_ptr.vmem [resolvable:$true] %s362_s11 }
  0x28   :  { %427 = vmatpush3.bf16.msra.mxu0 %v476_v1  ;;  %v484_v9 = vld [vmem:[#allocation4] sm:$0xff]   ;;  %v486_v11 = vld [vmem:[#allocation9 + $0x30] sm:$0xff]   ;;  %v487_v12 = vld [vmem:[#allocation9 + $0x28] sm:$0xff]   ;;  %s558_s12 = scalar_lea.vmem %s363_s11, 256  ;;  %p563_p2 = scmp.lt.s32.totalorder %s363_s11, %s363_s11 }
  0x29   :  { %428 = vmatprep.subr.bf16.mxu0 %v589_v0  ;;  %v485_v10 = vld [vmem:[#allocation9 + $0x38] sm:$0xff]   ;;  %v488_v13 = vld [vmem:[#allocation9 + $0x20] sm:$0xff]   ;;  %v490_v15 = vld [vmem:[#allocation9 + $0x10] sm:$0xff]   ;;  %p559_p1 = scmp.ne.s32.totalorder %s363_s11, %s558_s12  ;;  %p564_p3 = scmp.lt.s32.totalorder %s558_s12, %s558_s12 }
  0x2a   :  { %447 = vmatpush3.bf16.msra.mxu1 %v485_v10  ;;  %v489_v14 = vld [vmem:[#allocation9 + $0x18] sm:$0xff]   ;;  %v491_v16 = vld [vmem:[#allocation9 + $0x8] sm:$0xff]   ;;  %v492_v17 = vld [vmem:[#allocation9] sm:$0xff]  }
  0x2b   :  { %448 = vmatprep.subr.bf16.mxu1 %v589_v0  ;;  %v379_v18 = vld [vmem:[%s644_s2] ss:$0 sm:$0xff]  ;;  %p565_p4 = por %p564_p3, %p563_p2 }
  0x2c   :  { %429 = vmatpush3.bf16.msra.mxu0 %v477_v2  ;;  %v400_v37 = vld [vmem:[%s646_s4] ss:$0 sm:$0xff] }
  0x2d   :  { %430 = vmatprep.subr.bf16.mxu0 %v589_v0  ;;  %p566_p5 = pnand %p565_p4, %p559_p1 }
  0x2e   :  { %449 = vmatpush3.bf16.msra.mxu1 %v486_v11 }
  0x2f   :  { %450 = vmatprep.subr.bf16.mxu1 %v589_v0 }
  0x30   :  { %431 = vmatpush3.bf16.msra.mxu0 %v478_v3 }
  0x31   :  { %432 = vmatprep.subr.bf16.mxu0 %v589_v0 }
  0x32   :  { %451 = vmatpush3.bf16.msra.mxu1 %v487_v12 }
  0x33   :  { %452 = vmatprep.subr.bf16.mxu1 %v589_v0 }
  0x34   :  { %433 = vmatpush3.bf16.msra.mxu0 %v479_v4 }
  0x35   :  { %434 = vmatprep.subr.bf16.mxu0 %v589_v0 }
  0x36   :  { %453 = vmatpush3.bf16.msra.mxu1 %v488_v13 }
  0x37   :  { %454 = vmatprep.subr.bf16.mxu1 %v589_v0 }
  0x38   :  { %435 = vmatpush3.bf16.msra.mxu0 %v480_v5 }
  0x39   :  { %436 = vmatprep.subr.bf16.mxu0 %v589_v0 }
  0x3a   :  { %455 = vmatpush3.bf16.msra.mxu1 %v489_v14 }
  0x3b   :  { %456 = vmatprep.subr.bf16.mxu1 %v589_v0 }
  0x3c   :  { %437 = vmatpush3.bf16.msra.mxu0 %v481_v6 }
  0x3d   :  { %438 = vmatprep.subr.bf16.mxu0 %v589_v0 }
  0x3e   :  { %457 = vmatpush3.bf16.msra.mxu1 %v490_v15 }
  0x3f   :  { %458 = vmatprep.subr.bf16.mxu1 %v589_v0 }
  0x40   :  { %439 = vmatpush3.bf16.msra.mxu0 %v482_v7 }
  0x41   :  { %440 = vmatprep.subr.bf16.mxu0 %v589_v0 }
  0x42   :  { %459 = vmatpush3.bf16.msra.mxu1 %v491_v16 }
  0x43   :  { %460 = vmatprep.subr.bf16.mxu1 %v589_v0 }
  0x44   :  { %441 = vmatpush3.bf16.msra.mxu0 %v483_v8 }
  0x46   :  { %461 = vmatpush3.bf16.msra.mxu1 %v492_v17 }
  0x47   :  { %443 = vmatmul.mubr.bf16.vlgmr.msra.gmra.mxu0 %v484_v9 }
 0x107   :  { %v187_v19 = vpop.f32.mrf.mxu0 }
 0x108   :  { %v188_v20 = vadd.f32 %v379_v18, %v187_v19 }
 0x109   :  { %v444_v21 = vpop.f32.mrf.mxu0 }
 0x10a   :  { %v196_v22 = vmul.f32 0.70710677, %v188_v20  ;;  %v194_v30 = vmul.f32 0.5, %v188_v20 }
 0x10b   :  { %v190_v23 = vpop.f32.mrf.mxu0 }
 0x10c   :  { %494 = verf.f32 %v196_v22  ;;  %v191_v24 = vadd.f32 %v379_v18, %v190_v23 }
 0x10d   :  { %v445_v25 = vpop.f32.mrf.mxu0 }
 0x10e   :  { %v197_v26 = vmul.f32 0.70710677, %v191_v24  ;;  %v195_v31 = vmul.f32 0.5, %v191_v24 }
 0x110   :  { %496 = verf.f32 %v197_v26 }
 0x119   :  { %v495_v27 = vpop.eup %494 }
 0x11a   :  { %v200_v28 = vadd.f32 1.0, %v495_v27 }
 0x11c   :  { %v202_v33 = vmul.f32 %v200_v28, %v194_v30 }
 0x11d   :  { %v497_v29 = vpop.eup %496 }
 0x11e   :  { %v201_v32 = vadd.f32 1.0, %v497_v29 }
 0x120   :  { %v203_v34 = vmul.f32 %v201_v32, %v195_v31 }
 0x122   :  { %v406_v35 = vpack.c.bf16 %v203_v34, %v202_v33 }
 0x124   :  { %407 = vst [vmem:[#allocation3] sm:$0xff] %v406_v35  }
 0x12b   :  { %v493_v36 = vld [vmem:[#allocation3] sm:$0xff]  }
 0x12c   :  { %463 = vmatmul.mubr.bf16.vlgmr.msra.gmra.mxu1 %v493_v36 }
 0x1ec   :  { %v330_v38 = vpop.f32.mrf.mxu1 }
 0x1ed   :  { %v353_v39 = vadd.f32 %v400_v37, %v330_v38 }
 0x1ee   :  { %v464_v40 = vpop.f32.mrf.mxu1 }
 0x1ef   :  { %355 = vst [vmem:[#allocation10] sm:$0xff] %v353_v39 }
 0x1f0   :  { %v333_v41 = vpop.f32.mrf.mxu1 }
 0x1f1   :  { %v354_v42 = vadd.f32 %v400_v37, %v333_v41 }
 0x1f2   :  { %v465_v43 = vpop.f32.mrf.mxu1 }
 0x1f3   :  { %356 = vst [vmem:[#allocation10 + $0x8] sm:$0xff] %v354_v42 }
 0x1f4   :  { %569 = shalt.err (!%p566_p5)
}
 0x1f5   :  { %s592_s13 = smov 128   ;;  %s593_s4 = smov 8  }
 0x1f6   :  { %368 = dma.vmem_to_hbm [thread:$0]  %s363_s11, 256, %s647_s5, [#allocation6], %s592_s13, %s592_s13, %s593_s4  }
 0x1f7   :  { %582 = dma.done.wait [#allocation6], 256  }
 0x1f8   :  { %583 = vsyncadd [#allocation6], 4294967040 }
 0x1f9   :  { %372 = vsyncpa [#allocation5], 1 }
 0x1fa   :  { %373 = vsyncpa [#allocation8], 1 }
 0x1fb   :  { %374 = vsyncpa [#allocation6], 1 }

</bundles_post_ra>
